<compile_context>
chip_gen: v6e
topology: v6e:2x2x1
jax: 0.10.0
libtpu: 0.0.40
codegen_flags: <defaults>
</compile_context>

<pallas_src>
import jax
import jax.numpy as jnp
from jax.experimental import pallas as pl
from jax.experimental.pallas import tpu as pltpu

IN_FEATURES = 128
OUT_FEATURES = 56          # -> 28 ordinal bins x 2 logits each
N_BINS = OUT_FEATURES // 2
DEFAULT_TILE_B = 4096      # 2 MiB x tile (f32); fits v5e/v6e/v7x VMEM with double-buffering


def _round_up(n, m):
    return ((n + m - 1) // m) * m


def _dor_kernel(x_ref, w_ref, b_ref, o_ref):
    # x_ref: (TILE_B, 128)   w_ref: (128, 28)   b_ref: (1, 28)   o_ref: (TILE_B, 28)
    y = jnp.dot(x_ref[...], w_ref[...], preferred_element_type=jnp.float32) + b_ref[...]
    # sigmoid(y_odd - y_even) == exp(y_odd) / (exp(y_even) + exp(y_odd)), numerically stable.
    o_ref[...] = jax.nn.sigmoid(y).astype(o_ref.dtype)


def prepare_dor_params(weight, bias):
    """One-time (model-load) preprocessing of the nn.Linear(128, 56) parameters.

    weight: (56, 128) f32 (PyTorch layout), bias: (56,) f32.
    Returns (w_diff_t: (128, 28), b_diff: (1, 28)).
    """
    w_even = weight[0::2, :]                     # class-0 logit rows, (28, 128)
    w_odd = weight[1::2, :]                      # class-1 logit rows, (28, 128)
    w_diff_t = jnp.transpose(w_odd - w_even)     # (128, 28)
    b_diff = (bias[1::2] - bias[0::2]).reshape(1, N_BINS)
    return w_diff_t, b_diff


def dor_forward(x, w_diff_t, b_diff, *, tile_b=DEFAULT_TILE_B):
    """x: (B, 128) f32. Returns (B, 28, 1, 1) f32 matching the PyTorch module."""
    B = x.shape[0]
    if B == 0:
        return jnp.zeros((0, N_BINS, 1, 1), dtype=jnp.float32)

    # Tile sizing:
    #   - big enough to amortize ~0.35 us/step pipeline overhead,
    #   - small enough to stay within scoped VMEM on every generation,
    #   - capped at round_up(cdiv(B, 2), 8) so medium batches give >= 2 grid steps
    #     and the "parallel" axis shards across v7x's two TensorCores.
    tile_b = min(tile_b, _round_up(pl.cdiv(B, 2), 8))
    tile_b = max(tile_b, 8)
    grid = (pl.cdiv(B, tile_b),)   # ragged final block is masked by Pallas — no padding pass

    bytes_accessed = (B * (IN_FEATURES + N_BINS) * 4            # stream x + write out
                      + (IN_FEATURES + 1) * N_BINS * 4)         # resident weights + bias

    out = pl.pallas_call(
        _dor_kernel,
        out_shape=jax.ShapeDtypeStruct((B, N_BINS), jnp.float32),
        grid=grid,
        in_specs=[
            pl.BlockSpec((tile_b, IN_FEATURES), lambda i: (i, 0)),   # streamed batch tile
            pl.BlockSpec((IN_FEATURES, N_BINS), lambda i: (0, 0)),   # VMEM-resident weights
            pl.BlockSpec((1, N_BINS), lambda i: (0, 0)),             # VMEM-resident bias
        ],
        out_specs=pl.BlockSpec((tile_b, N_BINS), lambda i: (i, 0)),
        compiler_params=pltpu.CompilerParams(
            dimension_semantics=("parallel",),
            vmem_limit_bytes=32 << 20,   # headroom for the 4096-row tile on v5e's 16 MiB default
        ),
        cost_estimate=pl.CostEstimate(
            flops=2 * B * IN_FEATURES * N_BINS,
            transcendentals=B * N_BINS,
            bytes_accessed=bytes_accessed,
        ),
    )(x, w_diff_t, b_diff)

    # Match PyTorch output shape (B, 28, 1, 1).
    return out.reshape(B, N_BINS, 1, 1)


def _reference_forward(x, weight, bias):
    """Pure-JAX reference mirroring the PyTorch module exactly."""
    y = x @ weight.T + bias                              # (B, 56)
    y = y.reshape(x.shape[0], N_BINS, 2, 1, 1)
    denom = jnp.sum(jnp.exp(y), axis=2)                  # (B, 28, 1, 1)
    return jnp.exp(y[:, :, 1, :, :]) / denom


if __name__ == "__main__":
    key = jax.random.PRNGKey(0)
    k_x, k_w, k_b, k_x2 = jax.random.split(key, 4)

    # Deterministic parameter init (nn.Linear-style uniform bound 1/sqrt(fan_in)).
    bound = 1.0 / (IN_FEATURES ** 0.5)
    weight = jax.random.uniform(k_w, (OUT_FEATURES, IN_FEATURES),
                                minval=-bound, maxval=bound, dtype=jnp.float32)
    bias = jax.random.uniform(k_b, (OUT_FEATURES,),
                              minval=-bound, maxval=bound, dtype=jnp.float32)

    # Hoisted weight preprocessing (model-load time, not per call).
    w_diff_t, b_diff = prepare_dor_params(weight, bias)

    # --- Test 1: small batch (single grid step, masked partial block) ---
    B = 2
    x = jax.random.normal(k_x, (B, IN_FEATURES), dtype=jnp.float32)
    out = jax.block_until_ready(dor_forward(x, w_diff_t, b_diff))
    ref = jax.block_until_ready(_reference_forward(x, weight, bias))
    assert out.shape == (B, N_BINS, 1, 1), out.shape
    assert jnp.allclose(out, ref, atol=1e-5, rtol=1e-5), float(jnp.max(jnp.abs(out - ref)))

    # --- Test 2: ragged batch spanning multiple grid steps (masked final block) ---
    B2 = 37
    x2 = jax.random.normal(k_x2, (B2, IN_FEATURES), dtype=jnp.float32)
    out2 = jax.block_until_ready(dor_forward(x2, w_diff_t, b_diff))
    ref2 = jax.block_until_ready(_reference_forward(x2, weight, bias))
    assert out2.shape == (B2, N_BINS, 1, 1), out2.shape
    assert jnp.allclose(out2, ref2, atol=1e-5, rtol=1e-5), float(jnp.max(jnp.abs(out2 - ref2)))

    print("KERNEL_OK")
</pallas_src>

<mosaic_0001>
module attributes {stable_mosaic.version = 11 : i64} {
  func.func @_dor_kernel(%arg0: i32, %arg1: memref<8x128xf32, #tpu.memory_space<vmem>>, %arg2: memref<128x28xf32, #tpu.memory_space<vmem>>, %arg3: memref<1x28xf32, #tpu.memory_space<vmem>>, %arg4: memref<8x28xf32, #tpu.memory_space<vmem>>) attributes {dimension_semantics = [#tpu.dimension_semantics<parallel>], iteration_bounds = array<i64: 1>, scalar_prefetch = 0 : i64, scratch_operands = 0 : i64, tpu.core_type = #tpu.core_type<tc>, window_params = [{transform_indices = @transform_0, window_bounds = array<i64: 8, 128>}, {pipeline_mode = #tpu.pipeline_mode<synchronous>, transform_indices = @transform_1, window_bounds = array<i64: 128, 28>}, {pipeline_mode = #tpu.pipeline_mode<synchronous>, transform_indices = @transform_2, window_bounds = array<i64: 1, 28>}, {transform_indices = @transform_3, window_bounds = array<i64: 8, 28>}]} {
    %c0 = arith.constant 0 : index
    %c0_0 = arith.constant 0 : index
    %0 = vector.load %arg1[%c0, %c0_0] : memref<8x128xf32, #tpu.memory_space<vmem>>, vector<8x128xf32>
    %c0_1 = arith.constant 0 : index
    %c0_2 = arith.constant 0 : index
    %1 = vector.load %arg2[%c0_1, %c0_2] : memref<128x28xf32, #tpu.memory_space<vmem>>, vector<128x28xf32>
    %cst = arith.constant dense<0.000000e+00> : vector<8x28xf32>
    %2 = tpu.matmul %0, %1, %cst {dimension_numbers = #tpu.dot_dimension_numbers<[1], [0], [0], [1], [0, 0, 1, 1], [], []>} : vector<8x128xf32>, vector<128x28xf32>, vector<8x28xf32> -> vector<8x28xf32>
    %c0_3 = arith.constant 0 : index
    %c0_4 = arith.constant 0 : index
    %3 = vector.load %arg3[%c0_3, %c0_4] : memref<1x28xf32, #tpu.memory_space<vmem>>, vector<1x28xf32>
    %4 = vector.broadcast %3 : vector<1x28xf32> to vector<8x28xf32>
    %5 = arith.addf %2, %4 : vector<8x28xf32>
    %6 = arith.negf %5 : vector<8x28xf32>
    %7 = math.exp %6 : vector<8x28xf32>
    %cst_5 = arith.constant 1.000000e+00 : f32
    %8 = vector.broadcast %cst_5 : f32 to vector<8x28xf32>
    %9 = arith.addf %8, %7 : vector<8x28xf32>
    %10 = arith.divf %8, %9 : vector<8x28xf32>
    %c0_6 = arith.constant 0 : index
    %c0_7 = arith.constant 0 : index
    %11 = vector.load %arg4[%c0_6, %c0_7] : memref<8x28xf32, #tpu.memory_space<vmem>>, vector<8x28xf32>
    tpu.vector_store %arg4[%c0_6, %c0_7], %10 {strides = array<i32>} : memref<8x28xf32, #tpu.memory_space<vmem>>, vector<8x28xf32>,
    return
  }
  func.func @transform_0(%arg0: i32) -> (i32, i32) {
    %c0_i32 = arith.constant 0 : i32
    %c0_i32_0 = arith.constant 0 : i32
    return %arg0, %c0_i32 : i32, i32
  }
  func.func @transform_1(%arg0: i32) -> (i32, i32) {
    %c0_i32 = arith.constant 0 : i32
    %c0_i32_0 = arith.constant 0 : i32
    %c0_i32_1 = arith.constant 0 : i32
    return %c0_i32, %c0_i32_0 : i32, i32
  }
  func.func @transform_2(%arg0: i32) -> (i32, i32) {
    %c0_i32 = arith.constant 0 : i32
    %c0_i32_0 = arith.constant 0 : i32
    %c0_i32_1 = arith.constant 0 : i32
    return %c0_i32, %c0_i32_0 : i32, i32
  }
  func.func @transform_3(%arg0: i32) -> (i32, i32) {
    %c0_i32 = arith.constant 0 : i32
    %c0_i32_0 = arith.constant 0 : i32
    return %arg0, %c0_i32 : i32, i32
  }
}

</mosaic_0001>

<bundles_post_ra>
// kernel: tpu_custom_call.1
= control target key start
LH: loop header
LB: loop body
LE: loop exit
PB: predicated region body
PF: predicated region fallthrough
CT: control target
= control target key end

     0   :  { %8 = vsyncpa [#allocation3], 0  ;;  %v218_v1 = vmov 0.0   ;;  %vm219_vm0 = vmmov 0   ;;  %vm115_vm1 = vcmask 228352   ;;  %s300_s0 = inlined_call_operand.vmem [shape: f32[2,128], index: 0, kind: input, shape index: {}]   ;;  %s301_s1 = inlined_call_operand.vmem [shape: f32[128,28], index: 1, kind: input, shape index: {}]   ;;  %s302_s2 = inlined_call_operand.vmem [shape: f32[1,28], index: 2, kind: input, shape index: {}]   ;;  %s303_s3 = inlined_call_operand.hbm [shape: f32[2,28], index: 3, kind: output, shape index: {}]  }
   0x1   :  { %v31_v0 = vld [vmem:[%s301_s1 + $0x78] sm:$0xff]  ;;  %152 = vmatprep.subr.mxu0 %v218_v1  ;;  %v30_v2 = vld [vmem:[%s301_s1 + $0x70] sm:$0xff]  ;;  %184 = vmatprep.mubr.msk.f32.mxu0 %vm219_vm0, %v218_v1  ;;  %v29_v3 = vld [vmem:[%s301_s1 + $0x68] sm:$0xff] }
   0x2   :  { %153 = vmatpush3.msra.mxu0 %v31_v0  ;;  %v28_v4 = vld [vmem:[%s301_s1 + $0x60] sm:$0xff]  ;;  %v27_v5 = vld [vmem:[%s301_s1 + $0x58] sm:$0xff]  ;;  %v26_v6 = vld [vmem:[%s301_s1 + $0x50] sm:$0xff] }
   0x3   :  { %154 = vmatprep.subr.mxu0 %v218_v1  ;;  %v25_v7 = vld [vmem:[%s301_s1 + $0x48] sm:$0xff]  ;;  %v24_v8 = vld [vmem:[%s301_s1 + $0x40] sm:$0xff]  ;;  %v23_v9 = vld [vmem:[%s301_s1 + $0x38] sm:$0xff] }
   0x4   :  { %155 = vmatpush3.msra.mxu0 %v30_v2  ;;  %v22_v10 = vld [vmem:[%s301_s1 + $0x30] sm:$0xff]  ;;  %v21_v11 = vld [vmem:[%s301_s1 + $0x28] sm:$0xff]  ;;  %v20_v12 = vld [vmem:[%s301_s1 + $0x20] sm:$0xff] }
   0x5   :  { %156 = vmatprep.subr.mxu0 %v218_v1  ;;  %v19_v13 = vld [vmem:[%s301_s1 + $0x18] sm:$0xff]  ;;  %v18_v14 = vld [vmem:[%s301_s1 + $0x10] sm:$0xff]  ;;  %v17_v15 = vld [vmem:[%s301_s1 + $0x8] sm:$0xff] }
   0x6   :  { %157 = vmatpush3.msra.mxu0 %v29_v3  ;;  %v16_v16 = vld [vmem:[%s301_s1] sm:$0xff] }
   0x7   :  { %158 = vmatprep.subr.mxu0 %v218_v1  ;;  %v15_v17 = vld [vmem:[%s300_s0] sm:$0xff] }
   0x8   :  { %159 = vmatpush3.msra.mxu0 %v28_v4  ;;  %v133_v18 = vld [vmem:[%s302_s2] ss:$0 sm:$0xff] }
   0x9   :  { %160 = vmatprep.subr.mxu0 %v218_v1 }
   0xa   :  { %161 = vmatpush3.msra.mxu0 %v27_v5 }
   0xb   :  { %162 = vmatprep.subr.mxu0 %v218_v1 }
   0xc   :  { %163 = vmatpush3.msra.mxu0 %v26_v6 }
   0xd   :  { %164 = vmatprep.subr.mxu0 %v218_v1 }
   0xe   :  { %165 = vmatpush3.msra.mxu0 %v25_v7 }
   0xf   :  { %166 = vmatprep.subr.mxu0 %v218_v1 }
  0x10   :  { %167 = vmatpush3.msra.mxu0 %v24_v8 }
  0x11   :  { %168 = vmatprep.subr.mxu0 %v218_v1 }
  0x12   :  { %169 = vmatpush3.msra.mxu0 %v23_v9 }
  0x13   :  { %170 = vmatprep.subr.mxu0 %v218_v1 }
  0x14   :  { %171 = vmatpush3.msra.mxu0 %v22_v10 }
  0x15   :  { %172 = vmatprep.subr.mxu0 %v218_v1 }
  0x16   :  { %173 = vmatpush3.msra.mxu0 %v21_v11 }
  0x17   :  { %174 = vmatprep.subr.mxu0 %v218_v1 }
  0x18   :  { %175 = vmatpush3.msra.mxu0 %v20_v12 }
  0x19   :  { %176 = vmatprep.subr.mxu0 %v218_v1 }
  0x1a   :  { %177 = vmatpush3.msra.mxu0 %v19_v13 }
  0x1b   :  { %178 = vmatprep.subr.mxu0 %v218_v1 }
  0x1c   :  { %179 = vmatpush3.msra.mxu0 %v18_v14 }
  0x1d   :  { %180 = vmatprep.subr.mxu0 %v218_v1 }
  0x1e   :  { %181 = vmatpush3.msra.mxu0 %v17_v15 }
  0x1f   :  { %182 = vmatprep.subr.mxu0 %v218_v1 }
  0x20   :  { %183 = vmatpush3.msra.mxu0 %v16_v16 }
  0x21   :  { %185 = vmatmul.mubr.f32.vlgmr.msra.gmra.mxu0 %v15_v17 }
  0xe1   :  { %v105_v19 = vpop.f32.mrf.mxu0 }
  0xe2   :  { %v106_v20 = vadd.f32 %v133_v18, %v105_v19 }
  0xe3   :  { %v186_v21 = vpop.f32.mrf.mxu0 }
  0xe4   :  { %v134_v22 = vmul.f32 -1.442695, %v106_v20 }
  0xe6   :  { %192 = vpow2.f32 %v134_v22 }
  0xf3   :  { %v193_v23 = vpop.eup %192 }
  0xf4   :  { %v112_v24 = vadd.f32 1.0, %v193_v23 }
  0xf6   :  { %194 = vrcp.f32 %v112_v24 }
 0x103   :  { %v195_v25 = vpop.eup %194 }
 0x104   :  { %116 = vst.msk [vmem:[#allocation2] sm:$0xff] %vm115_vm1, %v195_v25 }
 0x105   :  { %121 = vsyncadd [#allocation3], 96  ;;  %s220_s0 = smov [#allocation2]  }
 0x106   :  { %s122_s1 = sshll.u32 %s220_s0, 4  ;;  %s123_s1 = int_to_ptr.vmem [resolvable:$true] %s122_s1 }
 0x107   :  { %s196_s21 = scalar_lea.vmem %s123_s1, 32  ;;  %s200_s22 = scalar_lea.vmem %s123_s1, 128 }
 0x108   :  { %p197_p0 = scmp.ne.s32.totalorder %s123_s1, %s196_s21  ;;  %p201_p1 = scmp.lt.s32.totalorder %s123_s1, %s123_s1 }
 0x109   :  { %p202_p2 = scmp.lt.s32.totalorder %s200_s22, %s196_s21 }
 0x10b   :  { %p203_p3 = por %p202_p2, %p201_p1 }
 0x10d   :  { %p204_p4 = pnand %p203_p3, %p197_p0 }
 0x10f   :  { %207 = shalt.err (!%p204_p4)
}
 0x110   :  { %s221_s2 = smov 32   ;;  %s222_s23 = smov 2  }
 0x111   :  { %128 = dma.vmem_to_hbm [thread:$0]  %s123_s1, 32, %s303_s3, [#allocation3], %s221_s2, %s221_s2, %s222_s23  }
 0x112   :  { %216 = dma.done.wait [#allocation3], 128  }
 0x113   :  { %217 = vsyncadd [#allocation3], 4294967168 }
 0x114   :  { %132 = vsyncpa [#allocation3], 1 }

</bundles_post_ra>
